<compile_context>
chip_gen: v6e
topology: v6e:2x2x1
jax: 0.10.0
libtpu: 0.0.40
codegen_flags: <defaults>
</compile_context>

<pallas_src>
import functools

import jax
import jax.numpy as jnp
from jax.experimental import pallas as pl
from jax.experimental.pallas import tpu as pltpu

ARCH = [(7, 64, 2, 3), 'M', (3, 192, 1, 1), 'M', (1, 128, 1, 0), (3, 256, 1, 1),
        (1, 256, 1, 0), (3, 512, 1, 1), 'M', [(1, 256, 1, 0), (3, 512, 1, 1), 4],
        (1, 512, 1, 0), (3, 1024, 1, 1), 'M', [(1, 512, 1, 0), (3, 1024, 1, 1), 2],
        (3, 1024, 1, 1), (3, 1024, 2, 1), (3, 1024, 1, 1), (3, 1024, 1, 1)]


def _round_up(x, m):
    return ((x + m - 1) // m) * m


def _largest_divisor_leq(n, cap):
    cap = max(1, min(cap, n))
    for d in range(cap, 0, -1):
        if n % d == 0:
            return d
    return 1


def _choose_tk(K):
    """K tile so that (a) activations need no K padding and (b) tiles stay ~<=1MB."""
    if K <= 1536:
        return K, K
    for t in (1536, 1280, 1152, 1024, 896, 768, 640, 512, 384, 256, 128):
        if K % t == 0:
            return t, K
    Kp = _round_up(K, 512)
    return 512, Kp


# ---------------------------------------------------------------------------
# Pallas kernels
# ---------------------------------------------------------------------------
def _matmul_bias_act_kernel(a_ref, b_ref, c_ref, o_ref, acc_ref, *, apply_act):
    """o = act(a @ b + c); BN scale is pre-folded into b. Accumulate over K grid axis."""
    k = pl.program_id(2)

    @pl.when(k == 0)
    def _():
        acc_ref[...] = jnp.zeros_like(acc_ref)

    acc_ref[...] += jnp.dot(a_ref[...], b_ref[...],
                            preferred_element_type=jnp.float32)

    @pl.when(k == pl.num_programs(2) - 1)
    def _():
        y = acc_ref[...] + c_ref[...]
        if apply_act:
            y = jnp.maximum(y, 0.1 * y)          # LeakyReLU(0.1)
        o_ref[...] = y.astype(o_ref.dtype)


def _maxpool_kernel(x_ref, o_ref, *, C):
    # x_ref block: (TR, 2, W2, 2*C); element (r, ph, w2, pw*C + c) == x[.., 2h2+ph, 2w2+pw, c]
    v = x_ref[...]
    m = jnp.maximum(v[:, 0, :, :], v[:, 1, :, :])      # reduce H phase
    o_ref[...] = jnp.maximum(m[:, :, :C], m[:, :, C:])  # reduce W phase


# ---------------------------------------------------------------------------
# Weight packing (done once at init: transpose + BN fold + pad, in bf16)
# ---------------------------------------------------------------------------
def pack_matmul_weight(w_mat, scale, bias):
    """w_mat: (K, N) f32, scale/bias: (N,). Returns pre-padded bf16 weight + f32 bias."""
    K, N = w_mat.shape
    w_mat = w_mat * scale[None, :]                    # fold BN scale into weights
    tk, Kp = _choose_tk(K)
    if N % 256 == 0:
        tn, Np = 256, N
    elif N <= 256:
        tn, Np = N, N                                  # full-dim lane block, no pad
    else:
        tn, Np = 256, _round_up(N, 256)
    w_p = jnp.pad(w_mat.astype(jnp.bfloat16), ((0, Kp - K), (0, Np - N)))
    b_p = jnp.pad(bias.astype(jnp.float32), (0, Np - N)).reshape(1, Np)
    return dict(w=w_p, b=b_p, K=K, N=N, tk=tk, tn=tn)


# ---------------------------------------------------------------------------
# Wrappers
# ---------------------------------------------------------------------------
def matmul_fused(a, packed, apply_act, out_dtype):
    """(M,K) @ packed['w'] with fused bias + optional LeakyReLU."""
    M, K = a.shape
    assert K == packed['K'], (K, packed['K'])
    Kp, Np = packed['w'].shape
    tk, tn = packed['tk'], packed['tn']
    tm = min(256, _round_up(M, 8))
    Mp = _round_up(M, tm)

    a = a.astype(jnp.bfloat16)
    if (Mp, Kp) != (M, K):
        a = jnp.pad(a, ((0, Mp - M), (0, Kp - K)))

    kernel = functools.partial(_matmul_bias_act_kernel, apply_act=apply_act)
    out = pl.pallas_call(
        kernel,
        out_shape=jax.ShapeDtypeStruct((Mp, Np), out_dtype),
        grid_spec=pltpu.PrefetchScalarGridSpec(
            num_scalar_prefetch=0,
            grid=(Mp // tm, Np // tn, Kp // tk),
            in_specs=[
                pl.BlockSpec((tm, tk), lambda i, j, k: (i, k)),
                pl.BlockSpec((tk, tn), lambda i, j, k: (k, j)),
                pl.BlockSpec((1, tn), lambda i, j, k: (0, j)),
            ],
            out_specs=pl.BlockSpec((tm, tn), lambda i, j, k: (i, j)),
            scratch_shapes=[pltpu.VMEM((tm, tn), jnp.float32)],
        ),
        compiler_params=pltpu.CompilerParams(
            dimension_semantics=("parallel", "parallel", "arbitrary")),
    )(a, packed['w'], packed['b'])

    if (Mp, Np) != (M, packed['N']):
        out = out[:M, :packed['N']]
    return out


def maxpool2x2(x):
    """x: NHWC, kernel=2, stride=2. Single pass, tiled over rows."""
    N, H, W, C = x.shape
    assert H % 2 == 0 and W % 2 == 0, "maxpool2x2 requires even H and W"
    H2, W2 = H // 2, W // 2
    R = N * H2
    xr = x.reshape(R, 2, W2, 2 * C)                   # contiguous reshape, no copy

    row_bytes = 2 * W2 * 2 * C * x.dtype.itemsize
    TR = _largest_divisor_leq(R, max(1, (2 << 20) // row_bytes))

    out = pl.pallas_call(
        functools.partial(_maxpool_kernel, C=C),
        out_shape=jax.ShapeDtypeStruct((R, W2, C), x.dtype),
        grid_spec=pltpu.PrefetchScalarGridSpec(
            num_scalar_prefetch=0,
            grid=(R // TR,),
            in_specs=[pl.BlockSpec((TR, 2, W2, 2 * C), lambda i: (i, 0, 0, 0))],
            out_specs=pl.BlockSpec((TR, W2, C), lambda i: (i, 0, 0)),
        ),
        compiler_params=pltpu.CompilerParams(dimension_semantics=("parallel",)),
    )(xr)
    return out.reshape(N, H2, W2, C)


def conv_bn_lrelu(x, layer):
    """x: NHWC bf16. Conv (bias=False) -> BN(eval, folded) -> LeakyReLU(0.1)."""
    N, H, W, Cin = x.shape
    K, s, p = layer['k'], layer['stride'], layer['pad']
    OH = (H + 2 * p - K) // s + 1
    OW = (W + 2 * p - K) // s + 1

    if K == 1 and s == 1 and p == 0:
        a = x.reshape(N * H * W, Cin)                 # free reshape, no im2col
    else:
        # im2col in bf16 (glue). K-axis ordering (kh, kw, cin) matches the packed weights.
        xp = jnp.pad(x, ((0, 0), (p, p), (p, p), (0, 0)))
        patches = [xp[:, kh:kh + s * (OH - 1) + 1:s,
                      kw:kw + s * (OW - 1) + 1:s, :]
                   for kh in range(K) for kw in range(K)]
        a = jnp.stack(patches, axis=3).reshape(N * OH * OW, K * K * Cin)

    y = matmul_fused(a, layer['packed'], apply_act=True, out_dtype=jnp.bfloat16)
    return y.reshape(N, OH, OW, layer['packed']['N'])


# ---------------------------------------------------------------------------
# Parameter construction (deterministic, synthetic)
# ---------------------------------------------------------------------------
def build_conv_specs(in_channels):
    specs = []
    c_in = in_channels
    for comp in ARCH:
        if isinstance(comp, tuple):
            specs.append((c_in, comp[1], comp[0], comp[2], comp[3]))
            c_in = comp[1]
        elif isinstance(comp, str):
            specs.append('M')
        elif isinstance(comp, list):
            c1, c2, rep = comp
            for _ in range(rep):
                specs.append((c_in, c1[1], c1[0], c1[2], c1[3]))
                specs.append((c1[1], c2[1], c2[0], c2[2], c2[3]))
                c_in = c2[1]
    return specs, c_in


def init_params(key, in_channels, S, B, C, eps=1e-5):
    specs, _ = build_conv_specs(in_channels)
    darknet = []
    for spec in specs:
        if spec == 'M':
            darknet.append(('pool',))
            continue
        cin, cout, k, s, p = spec
        key, sub = jax.random.split(key)
        fan_in = cin * k * k
        w = jax.random.normal(sub, (cout, cin, k, k), jnp.float32) * jnp.sqrt(2.0 / fan_in)
        gamma = jnp.ones((cout,), jnp.float32)        # BatchNorm2d init
        beta = jnp.zeros((cout,), jnp.float32)
        # BN eval-mode fold with running_mean=0, running_var=1.
        scale = gamma / jnp.sqrt(1.0 + eps)
        bias = beta
        w_mat = jnp.transpose(w, (2, 3, 1, 0)).reshape(k * k * cin, cout)
        packed = pack_matmul_weight(w_mat, scale, bias)
        darknet.append(('conv', dict(k=k, stride=s, pad=p, packed=packed)))

    out_dim = S * S * (C + B * 5)
    key, k1, k2, k3, k4 = jax.random.split(key, 5)
    fc1_w = jax.random.normal(k1, (1024 * S * S, 4096), jnp.float32) * jnp.sqrt(2.0 / (1024 * S * S))
    fc1_b = jax.random.normal(k2, (4096,), jnp.float32) * 0.01
    fc2_w = jax.random.normal(k3, (4096, out_dim), jnp.float32) * jnp.sqrt(1.0 / 4096)
    fc2_b = jax.random.normal(k4, (out_dim,), jnp.float32) * 0.01

    # Permute FC1 rows from PyTorch NCHW-flatten order to our NHWC-flatten order,
    # so the forward pass needs no runtime transpose before Flatten.
    fc1_w = fc1_w.reshape(1024, S, S, 4096).transpose(1, 2, 0, 3).reshape(1024 * S * S, 4096)

    fc1 = pack_matmul_weight(fc1_w, jnp.ones((4096,), jnp.float32), fc1_b)
    fc2 = pack_matmul_weight(fc2_w, jnp.ones((out_dim,), jnp.float32), fc2_b)
    return dict(darknet=darknet, fc1=fc1, fc2=fc2, out_dim=out_dim)


# ---------------------------------------------------------------------------
# Full forward
# ---------------------------------------------------------------------------
def yolo_v1_forward(x_nchw, params):
    x = jnp.transpose(x_nchw, (0, 2, 3, 1)).astype(jnp.bfloat16)   # NCHW -> NHWC, bf16
    for layer in params['darknet']:
        if layer[0] == 'pool':
            x = maxpool2x2(x)
        else:
            x = conv_bn_lrelu(x, layer[1])
    n = x.shape[0]
    x = x.reshape(n, -1)     # FC1 weight rows are pre-permuted to NHWC-flatten order
    x = matmul_fused(x, params['fc1'], apply_act=True, out_dtype=jnp.bfloat16)
    x = matmul_fused(x, params['fc2'], apply_act=False, out_dtype=jnp.float32)
    return x


if __name__ == "__main__":
    key = jax.random.PRNGKey(0)
    in_channels = 3
    # Small spatial input: 64x64 reduces by 64x through the darknet -> S = 1.
    S, B, C = 1, 2, 3
    batch = 2

    pkey, xkey = jax.random.split(key)
    params = init_params(pkey, in_channels, S, B, C)
    x = jax.random.normal(xkey, (batch, in_channels, 64, 64), jnp.float32)

    out = yolo_v1_forward(x, params)
    out = jax.block_until_ready(out)
    assert out.shape == (batch, S * S * (C + B * 5)), out.shape
    assert out.dtype == jnp.float32
    print("KERNEL_OK")
</pallas_src>

<mosaic_0001>
module attributes {stable_mosaic.version = 11 : i64} {
  func.func @_matmul_bias_act_kernel(%arg0: i32, %arg1: i32, %arg2: i32, %arg3: memref<256x147xbf16, #tpu.memory_space<vmem>>, %arg4: memref<147x64xbf16, #tpu.memory_space<vmem>>, %arg5: memref<1x64xf32, #tpu.memory_space<vmem>>, %arg6: memref<256x64xbf16, #tpu.memory_space<vmem>>, %arg7: memref<256x64xf32, #tpu.memory_space<vmem>>) attributes {dimension_semantics = [#tpu.dimension_semantics<parallel>, #tpu.dimension_semantics<parallel>, #tpu.dimension_semantics<arbitrary>], iteration_bounds = array<i64: 8, 1, 1>, scalar_prefetch = 0 : i64, scratch_operands = 1 : i64, tpu.core_type = #tpu.core_type<tc>, window_params = [{transform_indices = @transform_0, window_bounds = array<i64: 256, 147>}, {transform_indices = @transform_1, window_bounds = array<i64: 147, 64>}, {transform_indices = @transform_2, window_bounds = array<i64: 1, 64>}, {transform_indices = @transform_3, window_bounds = array<i64: 256, 64>}]} {
    %c0_i32 = arith.constant 0 : i32
    %0 = arith.cmpi eq, %arg2, %c0_i32 : i32
    %1 = arith.extui %0 : i1 to i32
    %c0_i32_0 = arith.constant 0 : i32
    %2 = arith.cmpi ne, %1, %c0_i32_0 : i32
    scf.if %2 {
      %cst_10 = arith.constant 0.000000e+00 : f32
      %12 = vector.broadcast %cst_10 : f32 to vector<256x64xf32>
      %c0_11 = arith.constant 0 : index
      %c0_12 = arith.constant 0 : index
      %13 = vector.load %arg7[%c0_11, %c0_12] : memref<256x64xf32, #tpu.memory_space<vmem>>, vector<256x64xf32>
      tpu.vector_store %arg7[%c0_11, %c0_12], %12 {strides = array<i32>} : memref<256x64xf32, #tpu.memory_space<vmem>>, vector<256x64xf32>,
    } else {
    }
    %c0 = arith.constant 0 : index
    %c0_1 = arith.constant 0 : index
    %3 = vector.load %arg7[%c0, %c0_1] : memref<256x64xf32, #tpu.memory_space<vmem>>, vector<256x64xf32>
    %c0_2 = arith.constant 0 : index
    %c0_3 = arith.constant 0 : index
    %4 = vector.load %arg3[%c0_2, %c0_3] : memref<256x147xbf16, #tpu.memory_space<vmem>>, vector<256x147xbf16>
    %c0_4 = arith.constant 0 : index
    %c0_5 = arith.constant 0 : index
    %5 = vector.load %arg4[%c0_4, %c0_5] : memref<147x64xbf16, #tpu.memory_space<vmem>>, vector<147x64xbf16>
    %cst = arith.constant dense<0.000000e+00> : vector<256x64xf32>
    %6 = tpu.matmul %4, %5, %cst {dimension_numbers = #tpu.dot_dimension_numbers<[1], [0], [0], [1], [0, 0, 1, 1], [], []>} : vector<256x147xbf16>, vector<147x64xbf16>, vector<256x64xf32> -> vector<256x64xf32>
    %7 = arith.addf %3, %6 : vector<256x64xf32>
    %c0_6 = arith.constant 0 : index
    %c0_7 = arith.constant 0 : index
    %8 = vector.load %arg7[%c0_6, %c0_7] : memref<256x64xf32, #tpu.memory_space<vmem>>, vector<256x64xf32>
    tpu.vector_store %arg7[%c0_6, %c0_7], %7 {strides = array<i32>} : memref<256x64xf32, #tpu.memory_space<vmem>>, vector<256x64xf32>,
    %c0_i32_8 = arith.constant 0 : i32
    %9 = arith.cmpi eq, %arg2, %c0_i32_8 : i32
    %10 = arith.extui %9 : i1 to i32
    %c0_i32_9 = arith.constant 0 : i32
    %11 = arith.cmpi ne, %10, %c0_i32_9 : i32
    scf.if %11 {
      %c0_10 = arith.constant 0 : index
      %c0_11 = arith.constant 0 : index
      %12 = vector.load %arg7[%c0_10, %c0_11] : memref<256x64xf32, #tpu.memory_space<vmem>>, vector<256x64xf32>
      %c0_12 = arith.constant 0 : index
      %c0_13 = arith.constant 0 : index
      %13 = vector.load %arg5[%c0_12, %c0_13] : memref<1x64xf32, #tpu.memory_space<vmem>>, vector<1x64xf32>
      %14 = vector.broadcast %13 : vector<1x64xf32> to vector<256x64xf32>
      %15 = arith.addf %12, %14 : vector<256x64xf32>
      %cst_14 = arith.constant 1.000000e-01 : f32
      %16 = vector.broadcast %cst_14 : f32 to vector<256x64xf32>
      %17 = arith.mulf %16, %15 : vector<256x64xf32>
      %18 = arith.maximumf %15, %17 : vector<256x64xf32>
      %19 = arith.truncf %18 : vector<256x64xf32> to vector<256x64xbf16>
      %c0_15 = arith.constant 0 : index
      %c0_16 = arith.constant 0 : index
      %20 = vector.load %arg6[%c0_15, %c0_16] : memref<256x64xbf16, #tpu.memory_space<vmem>>, vector<256x64xbf16>
      tpu.vector_store %arg6[%c0_15, %c0_16], %19 {strides = array<i32>} : memref<256x64xbf16, #tpu.memory_space<vmem>>, vector<256x64xbf16>,
    } else {
    }
    return
  }
  func.func @transform_0(%arg0: i32, %arg1: i32, %arg2: i32) -> (i32, i32) {
    %c0_i32 = arith.constant 0 : i32
    return %arg0, %arg2 : i32, i32
  }
  func.func @transform_1(%arg0: i32, %arg1: i32, %arg2: i32) -> (i32, i32) {
    %c0_i32 = arith.constant 0 : i32
    return %arg2, %arg1 : i32, i32
  }
  func.func @transform_2(%arg0: i32, %arg1: i32, %arg2: i32) -> (i32, i32) {
    %c0_i32 = arith.constant 0 : i32
    %c0_i32_0 = arith.constant 0 : i32
    return %c0_i32, %arg1 : i32, i32
  }
  func.func @transform_3(%arg0: i32, %arg1: i32, %arg2: i32) -> (i32, i32) {
    %c0_i32 = arith.constant 0 : i32
    return %arg0, %arg1 : i32, i32
  }
}

</mosaic_0001>

<bundles_post_ra>
// kernel: tpu_custom_call.1
= control target key start
LH: loop header
LB: loop body
LE: loop exit
PB: predicated region body
PF: predicated region fallthrough
CT: control target
= control target key end

     0   :  { %s1574_s12 = smov 0   ;;  %s1576_s13 = smov 0   ;;  %s1880_s0 = inlined_call_operand.vmem [shape: bf16[2048,147], index: 0, kind: input, shape index: {}]   ;;  %s1881_s1 = inlined_call_operand.vmem [shape: bf16[147,64], index: 1, kind: input, shape index: {}]   ;;  %s1882_s2 = inlined_call_operand.vmem [shape: f32[1,64], index: 2, kind: input, shape index: {}]   ;;  %s1883_s3 = inlined_call_operand.vmem [shape: bf16[2048,64], index: 3, kind: output, shape index: {}]  }
   0x1   :  { %s1578_s14 = smov 0  }
   0x2 LB: > { %s32_s15 = sadd.s32 1, %s1545_s13  ;;  %p1290_p0 = scmp.ge.s32.totalorder %s1549_s14, 1  ;;  %s1549_s14 = sphi %s1578_s14, %s13_s14   ;;  %s1545_s13 = sphi %s1576_s13, %s1885_s13   ;;  %s1541_s12 = sphi %s1574_s12, %s1884_s12  }
   0x3   : > { %p34_p1 = scmp.ge.s32.totalorder %s32_s15, 8  ;;  %p191_p2 = scmp.lt.s32.totalorder %s1549_s14, 9 }
   0x5   : > { %s1887_s15 = smov (%p34_p1, %s32_s15), 0  ;;  %p192_p3 = pnand %p1290_p0, %p191_p2 }
   0x6   : > { %s1291_s22 = sshll.u32 (!%p192_p3), %s1541_s12, 5 }
   0x7   : > { %195 = sbr.rel (%p192_p3) target bundleno = 326 (0x146), region = 32  ;;  %p236_p4 = scmp.lt.s32.totalorder (!%p192_p3), %s1291_s22, 255 }
   0xc   : > { %v1469_v0 = vld [vmem:[%s1881_s1 + $0x38] sm:$0xff]   ;;  %v1551_v1 = vmov 0   ;;  %v1470_v2 = vld [vmem:[%s1881_s1 + $0x30] sm:$0xff]   ;;  %v1471_v3 = vld [vmem:[%s1881_s1 + $0x28] sm:$0xff]   ;;  %s1889_s22 = smov (!%p236_p4, %s1291_s22), 255  ;;  %vm272_vm0 = vcmask 523264  }
   0xd   : > { %645 = vmatprep.subr.bf16.mxu0 %v1551_v1  ;;  %1422 = vmatprep.subr.bf16.mxu1 %v1551_v1  ;;  %v1472_v4 = vld [vmem:[%s1881_s1 + $0x20] sm:$0xff]   ;;  %s1389_s25 = sshll.u32 %s1889_s22, 3  ;;  %v1552_v5 = vmov 0.0   ;;  %v1473_v6 = vld [vmem:[%s1881_s1 + $0x18] sm:$0xff]   ;;  %vm589_vm1 = vcmask 154624   ;;  %v1474_v9 = vld [vmem:[%s1881_s1 + $0x10] sm:$0xff]  }
   0xe   : > { %646 = vmatpush1.bf16.msra.mxu0 %v1469_v0  ;;  %1432 = vmatpush1.bf16.msra.mxu1 %v1469_v0  ;;  %273 = vst.msk [vmem:[#allocation2] sm:$0xff] %vm272_vm0, %v1552_v5  ;;  %274 = vst.msk [vmem:[#allocation2 + $0x8] sm:$0xff] %vm272_vm0, %v1552_v5  ;;  %s1652_s28 = scalar_lea.vmem %s1880_s0, %s1389_s25  ;;  %vm638_vm2 = vcmask 1040384   ;;  %v1475_v10 = vld [vmem:[%s1881_s1 + $0x8] sm:$0xff]   ;;  %vm639_vm3 = vcmask 1041408   ;;  %v1553_v11 = vmov 65535  }
   0xf   : > { %647 = vmatprep.subr.bf16.mxu0 %v1551_v1  ;;  %1423 = vmatprep.subr.bf16.mxu1 %v1551_v1  ;;  %275 = vst.msk [vmem:[#allocation2 + $0x10] sm:$0xff] %vm272_vm0, %v1552_v5  ;;  %276 = vst.msk [vmem:[#allocation2 + $0x18] sm:$0xff] %vm272_vm0, %v1552_v5  ;;  %v1481_v7 = vld [vmem:[%s1652_s28 + $0x4] ss:$8 sps:$4 sm:$0xff]   ;;  %v640_v12 = vsel %vm638_vm2, 4294967295, %v1553_v11  ;;  %s1295_s19 = sshll.u32 %s1889_s22, 2 }
  0x10   : > { %277 = vst.msk [vmem:[#allocation2 + $0x20] sm:$0xff] %vm272_vm0, %v1552_v5  ;;  %278 = vst.msk [vmem:[#allocation2 + $0x28] sm:$0xff] %vm272_vm0, %v1552_v5  ;;  %v1484_v8 = vld [vmem:[%s1652_s28 + $0x84] ss:$8 sps:$4 sm:$0xff]   ;;  %1338 = vmatprep.mubr.msk.bf16.mxu0 %vm589_vm1, %v1481_v7  ;;  %v641_v15 = vsel %vm639_vm3, %v640_v12, 0  ;;  %s1753_s22 = scalar_lea.vmem %s1883_s3, %s1295_s19  ;;  %vm1137_vm4 = vcmask 519168  }
  0x11   : > { %279 = vst.msk [vmem:[#allocation2 + $0x30] sm:$0xff] %vm272_vm0, %v1552_v5  ;;  %280 = vst.msk [vmem:[#allocation2 + $0x38] sm:$0xff] %vm272_vm0, %v1552_v5  ;;  %1346 = vmatprep.mubr.msk.bf16.mxu1 %vm589_vm1, %v1484_v8  ;;  %v1476_v13 = vld [vmem:[%s1881_s1] sm:$0xff]   ;;  %v1477_v14 = vld [vmem:[%s1881_s1 + $0x48] ss:$0 sps:$4 sm:$0x33]  }
  0x12   : > { %648 = vmatpush1.bf16.msra.mxu0 %v1470_v2  ;;  %1433 = vmatpush1.bf16.msra.mxu1 %v1470_v2  ;;  %281 = vst.msk [vmem:[#allocation2 + $0x40] sm:$0xff] %vm272_vm0, %v1552_v5  ;;  %282 = vst.msk [vmem:[#allocation2 + $0x48] sm:$0xff] %vm272_vm0, %v1552_v5  ;;  %v643_v16 = vand.u32 %v1477_v14, %v641_v15  ;;  %v1478_v17 = vld [vmem:[%s1881_s1 + $0x40] sm:$0xff]   ;;  %v1485_v20 = vld [vmem:[%s1652_s28 + $0x14] ss:$8 sps:$4 sm:$0xff]  }
  0x13   : > { %649 = vmatprep.subr.bf16.mxu0 %v1551_v1  ;;  %1424 = vmatprep.subr.bf16.mxu1 %v1551_v1  ;;  %283 = vst.msk [vmem:[#allocation2 + $0x50] sm:$0xff] %vm272_vm0, %v1552_v5  ;;  %284 = vst.msk [vmem:[#allocation2 + $0x58] sm:$0xff] %vm272_vm0, %v1552_v5  ;;  %v1479_v18 = vld [vmem:[%s1652_s28] ss:$8 sps:$4 sm:$0xff]   ;;  %v1487_v21 = vld [vmem:[%s1652_s28 + $0x94] ss:$8 sps:$4 sm:$0xff]  }
  0x14   : > { %285 = vst.msk [vmem:[#allocation2 + $0x60] sm:$0xff] %vm272_vm0, %v1552_v5  ;;  %286 = vst.msk [vmem:[#allocation2 + $0x68] sm:$0xff] %vm272_vm0, %v1552_v5  ;;  %v1482_v19 = vld [vmem:[%s1652_s28 + $0x80] ss:$8 sps:$4 sm:$0xff]   ;;  %v1489_v22 = vld [vmem:[%s1652_s28 + $0x10] ss:$8 sps:$4 sm:$0xff]  }
  0x15   : > { %287 = vst.msk [vmem:[#allocation2 + $0x70] sm:$0xff] %vm272_vm0, %v1552_v5  ;;  %288 = vst.msk [vmem:[#allocation2 + $0x78] sm:$0xff] %vm272_vm0, %v1552_v5  ;;  %v1490_v23 = vld [vmem:[%s1652_s28 + $0x90] ss:$8 sps:$4 sm:$0xff]   ;;  %v1491_v24 = vld [vmem:[%s1652_s28 + $0x24] ss:$8 sps:$4 sm:$0xff]  }
  0x16   : > { %650 = vmatpush1.bf16.msra.mxu0 %v1471_v3  ;;  %1434 = vmatpush1.bf16.msra.mxu1 %v1471_v3  ;;  %289 = vst.msk [vmem:[#allocation2 + $0x80] sm:$0xff] %vm272_vm0, %v1552_v5  ;;  %290 = vst.msk [vmem:[#allocation2 + $0x88] sm:$0xff] %vm272_vm0, %v1552_v5  ;;  %v1493_v25 = vld [vmem:[%s1652_s28 + $0xa4] ss:$8 sps:$4 sm:$0xff]   ;;  %v1495_v26 = vld [vmem:[%s1652_s28 + $0x20] ss:$8 sps:$4 sm:$0xff]  }
  0x17   : > { %651 = vmatprep.subr.bf16.mxu0 %v1551_v1  ;;  %1425 = vmatprep.subr.bf16.mxu1 %v1551_v1  ;;  %291 = vst.msk [vmem:[#allocation2 + $0x90] sm:$0xff] %vm272_vm0, %v1552_v5  ;;  %292 = vst.msk [vmem:[#allocation2 + $0x98] sm:$0xff] %vm272_vm0, %v1552_v5  ;;  %v1496_v27 = vld [vmem:[%s1652_s28 + $0xa0] ss:$8 sps:$4 sm:$0xff]   ;;  %v1497_v28 = vld [vmem:[%s1652_s28 + $0x34] ss:$8 sps:$4 sm:$0xff]  }
  0x18   : > { %293 = vst.msk [vmem:[#allocation2 + $0xa0] sm:$0xff] %vm272_vm0, %v1552_v5  ;;  %294 = vst.msk [vmem:[#allocation2 + $0xa8] sm:$0xff] %vm272_vm0, %v1552_v5  ;;  %v1499_v29 = vld [vmem:[%s1652_s28 + $0xb4] ss:$8 sps:$4 sm:$0xff]   ;;  %v1501_v30 = vld [vmem:[%s1652_s28 + $0x30] ss:$8 sps:$4 sm:$0xff]  }
  0x19   : > { %295 = vst.msk [vmem:[#allocation2 + $0xb0] sm:$0xff] %vm272_vm0, %v1552_v5  ;;  %296 = vst.msk [vmem:[#allocation2 + $0xb8] sm:$0xff] %vm272_vm0, %v1552_v5  ;;  %v1502_v31 = vld [vmem:[%s1652_s28 + $0xb0] ss:$8 sps:$4 sm:$0xff]   ;;  %v1503_v32 = vld [vmem:[%s1652_s28 + $0x44] ss:$8 sps:$4 sm:$0xff]  }
  0x1a   : > { %297 = vst.msk [vmem:[#allocation2 + $0xc0] sm:$0xff] %vm272_vm0, %v1552_v5  ;;  %298 = vst.msk [vmem:[#allocation2 + $0xc8] sm:$0xff] %vm272_vm0, %v1552_v5  ;;  %652 = vmatpush1.bf16.msra.mxu0 %v1472_v4  ;;  %1435 = vmatpush1.bf16.msra.mxu1 %v1472_v4  ;;  %v1505_v33 = vld [vmem:[%s1652_s28 + $0xc4] ss:$8 sps:$4 sm:$0xff]   ;;  %v1507_v34 = vld [vmem:[%s1652_s28 + $0x40] ss:$8 sps:$4 sm:$0xff]  }
  0x1b   : > { %299 = vst.msk [vmem:[#allocation2 + $0xd0] sm:$0xff] %vm272_vm0, %v1552_v5  ;;  %300 = vst.msk [vmem:[#allocation2 + $0xd8] sm:$0xff] %vm272_vm0, %v1552_v5  ;;  %653 = vmatprep.subr.bf16.mxu0 %v1551_v1  ;;  %1426 = vmatprep.subr.bf16.mxu1 %v1551_v1  ;;  %v1508_v35 = vld [vmem:[%s1652_s28 + $0xc0] ss:$8 sps:$4 sm:$0xff]   ;;  %v1509_v36 = vld [vmem:[%s1652_s28 + $0x54] ss:$8 sps:$4 sm:$0xff]  }
  0x1c   : > { %301 = vst.msk [vmem:[#allocation2 + $0xe0] sm:$0xff] %vm272_vm0, %v1552_v5  ;;  %302 = vst.msk [vmem:[#allocation2 + $0xe8] sm:$0xff] %vm272_vm0, %v1552_v5  ;;  %v1511_v37 = vld [vmem:[%s1652_s28 + $0xd4] ss:$8 sps:$4 sm:$0xff]   ;;  %v1513_v38 = vld [vmem:[%s1652_s28 + $0x50] ss:$8 sps:$4 sm:$0xff]  }
  0x1d   : > { %303 = vst.msk [vmem:[#allocation2 + $0xf0] sm:$0xff] %vm272_vm0, %v1552_v5  ;;  %304 = vst.msk [vmem:[#allocation2 + $0xf8] sm:$0xff] %vm272_vm0, %v1552_v5  ;;  %v1514_v39 = vld [vmem:[%s1652_s28 + $0xd0] ss:$8 sps:$4 sm:$0xff]   ;;  %v1515_v40 = vld [vmem:[%s1652_s28 + $0x64] ss:$8 sps:$4 sm:$0xff]  }
  0x1e   : > { %654 = vmatpush1.bf16.msra.mxu0 %v1473_v6  ;;  %1436 = vmatpush1.bf16.msra.mxu1 %v1473_v6  ;;  %v1517_v41 = vld [vmem:[%s1652_s28 + $0xe4] ss:$8 sps:$4 sm:$0xff]   ;;  %v1519_v42 = vld [vmem:[%s1652_s28 + $0x60] ss:$8 sps:$4 sm:$0xff]   ;;  %v1521_v44 = vld [vmem:[%s1652_s28 + $0x74] ss:$8 sps:$4 sm:$0xff]  }
  0x1f   : > { %655 = vmatprep.subr.bf16.mxu0 %v1551_v1  ;;  %1427 = vmatprep.subr.bf16.mxu1 %v1551_v1  ;;  %v1520_v43 = vld [vmem:[%s1652_s28 + $0xe0] ss:$8 sps:$4 sm:$0xff]   ;;  %v1523_v45 = vld [vmem:[%s1652_s28 + $0xf4] ss:$8 sps:$4 sm:$0xff]   ;;  %v1525_v46 = vld [vmem:[%s1652_s28 + $0x70] ss:$8 sps:$4 sm:$0xff]  }
  0x20   : > { %v1526_v47 = vld [vmem:[%s1652_s28 + $0xf0] ss:$8 sps:$4 sm:$0xff]   ;;  %v305_v48 = vld [vmem:[#allocation2] sm:$0xff]  ;;  %v306_v56 = vld [vmem:[#allocation2 + $0x8] sm:$0xff] }
  0x21   : > { %v321_v49 = vld [vmem:[#allocation2 + $0x80] sm:$0xff]  ;;  %v322_v57 = vld [vmem:[#allocation2 + $0x88] sm:$0xff]  ;;  %v307_v0 = vld [vmem:[#allocation2 + $0x10] sm:$0xff] }
  0x22   : > { %656 = vmatpush1.bf16.msra.mxu0 %v1474_v9  ;;  %1437 = vmatpush1.bf16.msra.mxu1 %v1474_v9  ;;  %v1739_v2 = vld [vmem:[%s1882_s2] ss:$0 sm:$0xff]  ;;  %v308_v7 = vld [vmem:[#allocation2 + $0x18] sm:$0xff] }
  0x23   : > { %657 = vmatprep.subr.bf16.mxu0 %v1551_v1  ;;  %1428 = vmatprep.subr.bf16.mxu1 %v1551_v1  ;;  %v324_v12 = vld [vmem:[#allocation2 + $0x98] sm:$0xff] }
  0x26   : > { %658 = vmatpush1.bf16.msra.mxu0 %v1475_v10  ;;  %1438 = vmatpush1.bf16.msra.mxu1 %v1475_v10 }
  0x27   : > { %659 = vmatprep.subr.bf16.mxu0 %v1551_v1  ;;  %1429 = vmatprep.subr.bf16.mxu1 %v1551_v1 }
  0x2a   : > { %660 = vmatpush1.bf16.msra.mxu0 %v1476_v13  ;;  %1439 = vmatpush1.bf16.msra.mxu1 %v1476_v13 }
  0x2b   : > { %673 = vmatprep.subr.bf16.mxu0 %v1551_v1  ;;  %1430 = vmatprep.subr.bf16.mxu1 %v1551_v1 }
  0x2e   : > { %674 = vmatpush2.bf16.msra.mxu0 %v643_v16  ;;  %1440 = vmatpush2.bf16.msra.mxu1 %v643_v16 }
  0x2f   : > { %675 = vmatprep.subr.bf16.mxu0 %v1551_v1  ;;  %1431 = vmatprep.subr.bf16.mxu1 %v1551_v1  ;;  %v323_v1 = vld [vmem:[#allocation2 + $0x90] sm:$0xff] }
  0x32   : > { %676 = vmatpush2.bf16.msra.mxu0 %v1478_v17  ;;  %1441 = vmatpush2.bf16.msra.mxu1 %v1478_v17 }
  0x35   : > { %678 = vmatmul.mubr.bf16.vlgmr.msra.gmra.mxu0 %v1479_v18  ;;  %742 = vmatmul.mubr.bf16.vlgmr.msra.gmra.mxu1 %v1482_v19 }
  0x36   : > { %1339 = vmatprep.mubr.msk.bf16.mxu0 %vm589_vm1, %v1485_v20  ;;  %1347 = vmatprep.mubr.msk.bf16.mxu1 %vm589_vm1, %v1487_v21 }
  0x3d   : > { %686 = vmatmul.mubr.bf16.gmra.mxu0 %v1489_v22  ;;  %750 = vmatmul.mubr.bf16.gmra.mxu1 %v1490_v23 }
  0x3e   : > { %1340 = vmatprep.mubr.msk.bf16.mxu0 %vm589_vm1, %v1491_v24  ;;  %1348 = vmatprep.mubr.msk.bf16.mxu1 %vm589_vm1, %v1493_v25 }
  0x45   : > { %694 = vmatmul.mubr.bf16.gmra.mxu0 %v1495_v26  ;;  %758 = vmatmul.mubr.bf16.gmra.mxu1 %v1496_v27 }
  0x46   : > { %1341 = vmatprep.mubr.msk.bf16.mxu0 %vm589_vm1, %v1497_v28  ;;  %1349 = vmatprep.mubr.msk.bf16.mxu1 %vm589_vm1, %v1499_v29  ;;  %v309_v29 = vld [vmem:[#allocation2 + $0x20] sm:$0xff] }
  0x4d   : > { %702 = vmatmul.mubr.bf16.gmra.mxu0 %v1501_v30  ;;  %766 = vmatmul.mubr.bf16.gmra.mxu1 %v1502_v31  ;;  %v325_v30 = vld [vmem:[#allocation2 + $0xa0] sm:$0xff] }
  0x4e   : > { %1342 = vmatprep.mubr.msk.bf16.mxu0 %vm589_vm1, %v1503_v32  ;;  %1350 = vmatprep.mubr.msk.bf16.mxu1 %vm589_vm1, %v1505_v33 }
  0x55   : > { %710 = vmatmul.mubr.bf16.gmra.mxu0 %v1507_v34  ;;  %774 = vmatmul.mubr.bf16.gmra.mxu1 %v1508_v35 }
  0x56   : > { %1343 = vmatprep.mubr.msk.bf16.mxu0 %vm589_vm1, %v1509_v36  ;;  %1351 = vmatprep.mubr.msk.bf16.mxu1 %vm589_vm1, %v1511_v37 }
  0x5d   : > { %718 = vmatmul.mubr.bf16.gmra.mxu0 %v1513_v38  ;;  %782 = vmatmul.mubr.bf16.gmra.mxu1 %v1514_v39 }
  0x5e   : > { %1344 = vmatprep.mubr.msk.bf16.mxu0 %vm589_vm1, %v1515_v40  ;;  %1352 = vmatprep.mubr.msk.bf16.mxu1 %vm589_vm1, %v1517_v41 }
  0x65   : > { %726 = vmatmul.mubr.bf16.gmra.mxu0 %v1519_v42  ;;  %790 = vmatmul.mubr.bf16.gmra.mxu1 %v1520_v43 }
  0x66   : > { %1345 = vmatprep.mubr.msk.bf16.mxu0 %vm589_vm1, %v1521_v44  ;;  %1353 = vmatprep.mubr.msk.bf16.mxu1 %vm589_vm1, %v1523_v45 }
  0x6d   : > { %734 = vmatmul.mubr.bf16.gmra.mxu0 %v1525_v46  ;;  %798 = vmatmul.mubr.bf16.gmra.mxu1 %v1526_v47  ;;  %v310_v47 = vld [vmem:[#allocation2 + $0x28] sm:$0xff] }
  0xf5   : > { %v679_v50 = vpop.f32.mrf.mxu0  ;;  %v743_v51 = vpop.f32.mrf.mxu1 }
  0xf6   : > { %v806_v52 = vadd.f32 %v679_v50, %v305_v48  ;;  %v822_v53 = vadd.f32 %v743_v51, %v321_v49  ;;  %v326_v48 = vld [vmem:[#allocation2 + $0xa8] sm:$0xff] }
  0xf7   : > { %v681_v54 = vpop.f32.mrf.mxu0  ;;  %v745_v55 = vpop.f32.mrf.mxu1 }
  0xf8   : > { %839 = vst.msk [vmem:[#allocation2] sm:$0xff] %vm272_vm0, %v806_v52  ;;  %855 = vst.msk [vmem:[#allocation2 + $0x80] sm:$0xff] %vm272_vm0, %v822_v53 }
  0xf9   : > { %v682_v58 = vpop.f32.mrf.mxu0  ;;  %v746_v59 = vpop.f32.mrf.mxu1 }
  0xfa   : > { %v807_v60 = vadd.f32 %v682_v58, %v306_v56  ;;  %v823_v61 = vadd.f32 %v746_v59, %v322_v57 }
  0xfb   : > { %v684_v62 = vpop.f32.mrf.mxu0  ;;  %v748_v63 = vpop.f32.mrf.mxu1 }
  0xfc   : > { %840 = vst.msk [vmem:[#allocation2 + $0x8] sm:$0xff] %vm272_vm0, %v807_v60  ;;  %856 = vst.msk [vmem:[#allocation2 + $0x88] sm:$0xff] %vm272_vm0, %v823_v61 }
  0xfd   : > { %v687_v3 = vpop.f32.mrf.mxu0  ;;  %v751_v4 = vpop.f32.mrf.mxu1 }
  0xfe   : > { %v808_v5 = vadd.f32 %v687_v3, %v307_v0  ;;  %v824_v6 = vadd.f32 %v751_v4, %v323_v1  ;;  %v311_v1 = vld [vmem:[#allocation2 + $0x30] sm:$0xff] }
  0xff   : > { %v874_v8 = vld [vmem:[#allocation2] sm:$0xff]  ;;  %v689_v10 = vpop.f32.mrf.mxu0  ;;  %v753_v11 = vpop.f32.mrf.mxu1  ;;  %v327_v3 = vld [vmem:[#allocation2 + $0xb0] sm:$0xff] }
 0x100   : > { %v890_v9 = vld [vmem:[#allocation2 + $0x80] sm:$0xff]  ;;  %v913_v13 = vadd.f32 %v1739_v2, %v874_v8  ;;  %841 = vst.msk [vmem:[#allocation2 + $0x10] sm:$0xff] %vm272_vm0, %v808_v5  ;;  %857 = vst.msk [vmem:[#allocation2 + $0x90] sm:$0xff] %vm272_vm0, %v824_v6 }
 0x101   : > { %v929_v14 = vadd.f32 %v1739_v2, %v890_v9  ;;  %v690_v15 = vpop.f32.mrf.mxu0  ;;  %v754_v16 = vpop.f32.mrf.mxu1 }
 0x102   : > { %v945_v17 = vmul.f32 0.1, %v913_v13  ;;  %v809_v19 = vadd.f32 %v690_v15, %v308_v7  ;;  %v825_v20 = vadd.f32 %v754_v16, %v324_v12  ;;  %v328_v15 = vld [vmem:[#allocation2 + $0xb8] sm:$0xff] }
 0x103   : > { %v961_v18 = vmul.f32 0.1, %v929_v14  ;;  %v875_v21 = vld [vmem:[#allocation2 + $0x8] sm:$0xff]  ;;  %v692_v23 = vpop.f32.mrf.mxu0  ;;  %v756_v24 = vpop.f32.mrf.mxu1 }
 0x104   : > { %v891_v22 = vld [vmem:[#allocation2 + $0x88] sm:$0xff]  ;;  %v977_v25 = vmax.f32 %v913_v13, %v945_v17  ;;  %v914_v27 = vadd.f32 %v1739_v2, %v875_v21  ;;  %842 = vst.msk [vmem:[#allocation2 + $0x18] sm:$0xff] %vm272_vm0, %v809_v19  ;;  %858 = vst.msk [vmem:[#allocation2 + $0x98] sm:$0xff] %vm272_vm0, %v825_v20 }
 0x105   : > { %v993_v26 = vmax.f32 %v929_v14, %v961_v18  ;;  %v930_v28 = vadd.f32 %v1739_v2, %v891_v22  ;;  %v695_v31 = vpop.f32.mrf.mxu0  ;;  %v759_v32 = vpop.f32.mrf.mxu1  ;;  %v312_v14 = vld [vmem:[#allocation2 + $0x38] sm:$0xff] }
 0x106   : > { %v1390_v33 = vpack.c.bf16 %v977_v25, %v977_v25  ;;  %v946_v35 = vmul.f32 0.1, %v914_v27  ;;  %v810_v39 = vadd.f32 %v695_v31, %v309_v29  ;;  %v826_v40 = vadd.f32 %v759_v32, %v325_v30  ;;  %v313_v32 = vld [vmem:[#allocation2 + $0x40] sm:$0xff] }
 0x107   : > { %v1406_v34 = vpack.c.bf16 %v993_v26, %v993_v26  ;;  %v962_v36 = vmul.f32 0.1, %v930_v28  ;;  %v876_v37 = vld [vmem:[#allocation2 + $0x10] sm:$0xff]  ;;  %v697_v41 = vpop.f32.mrf.mxu0  ;;  %v761_v42 = vpop.f32.mrf.mxu1 }
 0x108   : > { %v892_v38 = vld [vmem:[#allocation2 + $0x90] sm:$0xff]  ;;  %1138 = vst.msk [vmem:[%s1753_s22] sm:$0xf] %vm1137_vm4, %v1390_v33  ;;  %v978_v43 = vmax.f32 %v914_v27, %v946_v35  ;;  %v915_v45 = vadd.f32 %v1739_v2, %v876_v37  ;;  %v329_v33 = vld [vmem:[#allocation2 + $0xc0] sm:$0xff] }
 0x109   : > { %1154 = vst.msk [vmem:[%s1753_s22 + $0x40] sm:$0xf] %vm1137_vm4, %v1406_v34  ;;  %v994_v44 = vmax.f32 %v930_v28, %v962_v36  ;;  %v931_v46 = vadd.f32 %v1739_v2, %v892_v38  ;;  %v698_v49 = vpop.f32.mrf.mxu0  ;;  %v762_v50 = vpop.f32.mrf.mxu1 }
 0x10a   : > { %843 = vst.msk [vmem:[#allocation2 + $0x20] sm:$0xff] %vm272_vm0, %v810_v39  ;;  %859 = vst.msk [vmem:[#allocation2 + $0xa0] sm:$0xff] %vm272_vm0, %v826_v40  ;;  %v1391_v51 = vpack.c.bf16 %v978_v43, %v978_v43  ;;  %v947_v53 = vmul.f32 0.1, %v915_v45  ;;  %v811_v57 = vadd.f32 %v698_v49, %v310_v47  ;;  %v827_v58 = vadd.f32 %v762_v50, %v326_v48  ;;  %v314_v50 = vld [vmem:[#allocation2 + $0x48] sm:$0xff] }
 0x10b   : > { %v1407_v52 = vpack.c.bf16 %v994_v44, %v994_v44  ;;  %v963_v54 = vmul.f32 0.1, %v931_v46  ;;  %v877_v55 = vld [vmem:[#allocation2 + $0x18] sm:$0xff]  ;;  %v700_v59 = vpop.f32.mrf.mxu0  ;;  %v764_v60 = vpop.f32.mrf.mxu1 }
 0x10c   : > { %v893_v56 = vld [vmem:[#allocation2 + $0x98] sm:$0xff]  ;;  %1139 = vst.msk [vmem:[%s1753_s22 + $0x4] sm:$0xf] %vm1137_vm4, %v1391_v51  ;;  %v979_v61 = vmax.f32 %v915_v45, %v947_v53  ;;  %v916_v63 = vadd.f32 %v1739_v2, %v877_v55  ;;  %v330_v51 = vld [vmem:[#allocation2 + $0xc8] sm:$0xff] }
 0x10d   : > { %1155 = vst.msk [vmem:[%s1753_s22 + $0x44] sm:$0xf] %vm1137_vm4, %v1407_v52  ;;  %v995_v62 = vmax.f32 %v931_v46, %v963_v54  ;;  %v932_v0 = vadd.f32 %v1739_v2, %v893_v56  ;;  %v703_v4 = vpop.f32.mrf.mxu0  ;;  %v767_v5 = vpop.f32.mrf.mxu1 }
 0x10e   : > { %844 = vst.msk [vmem:[#allocation2 + $0x28] sm:$0xff] %vm272_vm0, %v811_v57  ;;  %860 = vst.msk [vmem:[#allocation2 + $0xa8] sm:$0xff] %vm272_vm0, %v827_v58  ;;  %v1392_v6 = vpack.c.bf16 %v979_v61, %v979_v61  ;;  %v948_v8 = vmul.f32 0.1, %v916_v63  ;;  %v812_v10 = vadd.f32 %v703_v4, %v311_v1  ;;  %v828_v11 = vadd.f32 %v767_v5, %v327_v3 }
 0x10f   : > { %v1408_v7 = vpack.c.bf16 %v995_v62, %v995_v62  ;;  %v964_v9 = vmul.f32 0.1, %v932_v0  ;;  %v705_v12 = vpop.f32.mrf.mxu0  ;;  %v769_v13 = vpop.f32.mrf.mxu1  ;;  %v315_v62 = vld [vmem:[#allocation2 + $0x50] sm:$0xff] }
 0x110   : > { %1140 = vst.msk [vmem:[%s1753_s22 + $0x8] sm:$0xf] %vm1137_vm4, %v1392_v6  ;;  %v980_v16 = vmax.f32 %v916_v63, %v948_v8  ;;  %v331_v63 = vld [vmem:[#allocation2 + $0xd0] sm:$0xff] }
 0x111   : > { %1156 = vst.msk [vmem:[%s1753_s22 + $0x48] sm:$0xf] %vm1137_vm4, %v1408_v7  ;;  %v996_v17 = vmax.f32 %v932_v0, %v964_v9  ;;  %v878_v18 = vld [vmem:[#allocation2 + $0x20] sm:$0xff]  ;;  %v706_v22 = vpop.f32.mrf.mxu0  ;;  %v770_v23 = vpop.f32.mrf.mxu1 }
 0x112   : > { %v894_v19 = vld [vmem:[#allocation2 + $0xa0] sm:$0xff]  ;;  %v917_v20 = vadd.f32 %v1739_v2, %v878_v18  ;;  %845 = vst.msk [vmem:[#allocation2 + $0x30] sm:$0xff] %vm272_vm0, %v812_v10  ;;  %861 = vst.msk [vmem:[#allocation2 + $0xb0] sm:$0xff] %vm272_vm0, %v828_v11  ;;  %v1393_v24 = vpack.c.bf16 %v980_v16, %v980_v16  ;;  %v813_v26 = vadd.f32 %v706_v22, %v312_v14 }
 0x113   : > { %v933_v21 = vadd.f32 %v1739_v2, %v894_v19  ;;  %v1409_v25 = vpack.c.bf16 %v996_v17, %v996_v17  ;;  %v829_v27 = vadd.f32 %v770_v23, %v328_v15  ;;  %v708_v30 = vpop.f32.mrf.mxu0  ;;  %v772_v31 = vpop.f32.mrf.mxu1 }
 0x114   : > { %v949_v28 = vmul.f32 0.1, %v917_v20  ;;  %1141 = vst.msk [vmem:[%s1753_s22 + $0xc] sm:$0xf] %vm1137_vm4, %v1393_v24  ;;  %v332_v30 = vld [vmem:[#allocation2 + $0xd8] sm:$0xff] }
 0x115   : > { %v965_v29 = vmul.f32 0.1, %v933_v21  ;;  %1157 = vst.msk [vmem:[%s1753_s22 + $0x4c] sm:$0xf] %vm1137_vm4, %v1409_v25  ;;  %v879_v34 = vld [vmem:[#allocation2 + $0x28] sm:$0xff]  ;;  %v711_v40 = vpop.f32.mrf.mxu0  ;;  %v775_v41 = vpop.f32.mrf.mxu1 }
 0x116   : > { %v895_v35 = vld [vmem:[#allocation2 + $0xa8] sm:$0xff]  ;;  %846 = vst.msk [vmem:[#allocation2 + $0x38] sm:$0xff] %vm272_vm0, %v813_v26  ;;  %862 = vst.msk [vmem:[#allocation2 + $0xb8] sm:$0xff] %vm272_vm0, %v829_v27  ;;  %v981_v36 = vmax.f32 %v917_v20, %v949_v28  ;;  %v918_v38 = vadd.f32 %v1739_v2, %v879_v34  ;;  %v814_v42 = vadd.f32 %v711_v40, %v313_v32 }
 0x117   : > { %v997_v37 = vmax.f32 %v933_v21, %v965_v29  ;;  %v934_v39 = vadd.f32 %v1739_v2, %v895_v35  ;;  %v830_v43 = vadd.f32 %v775_v41, %v329_v33  ;;  %v713_v48 = vpop.f32.mrf.mxu0  ;;  %v777_v49 = vpop.f32.mrf.mxu1  ;;  %v316_v29 = vld [vmem:[#allocation2 + $0x58] sm:$0xff] }
 0x118   : > { %v1394_v44 = vpack.c.bf16 %v981_v36, %v981_v36  ;;  %v950_v46 = vmul.f32 0.1, %v918_v38  ;;  %847 = vst.msk [vmem:[#allocation2 + $0x40] sm:$0xff] %vm272_vm0, %v814_v42  ;;  %v333_v48 = vld [vmem:[#allocation2 + $0xe0] sm:$0xff] }
 0x119   : > { %v1410_v45 = vpack.c.bf16 %v997_v37, %v997_v37  ;;  %v966_v47 = vmul.f32 0.1, %v934_v39  ;;  %v880_v52 = vld [vmem:[#allocation2 + $0x30] sm:$0xff]  ;;  %863 = vst.msk [vmem:[#allocation2 + $0xc0] sm:$0xff] %vm272_vm0, %v830_v43  ;;  %v714_v58 = vpop.f32.mrf.mxu0  ;;  %v778_v59 = vpop.f32.mrf.mxu1 }
 0x11a   : > { %v896_v53 = vld [vmem:[#allocation2 + $0xb0] sm:$0xff]  ;;  %1142 = vst.msk [vmem:[%s1753_s22 + $0x10] sm:$0xf] %vm1137_vm4, %v1394_v44  ;;  %v982_v54 = vmax.f32 %v918_v38, %v950_v46  ;;  %v919_v56 = vadd.f32 %v1739_v2, %v880_v52  ;;  %v815_v60 = vadd.f32 %v714_v58, %v314_v50  ;;  %v831_v61 = vadd.f32 %v778_v59, %v330_v51 }
 0x11b   : > { %1158 = vst.msk [vmem:[%s1753_s22 + $0x50] sm:$0xf] %vm1137_vm4, %v1410_v45  ;;  %v998_v55 = vmax.f32 %v934_v39, %v966_v47  ;;  %v935_v57 = vadd.f32 %v1739_v2, %v896_v53  ;;  %v716_v7 = vpop.f32.mrf.mxu0  ;;  %v780_v8 = vpop.f32.mrf.mxu1  ;;  %v317_v47 = vld [vmem:[#allocation2 + $0x60] sm:$0xff] }
 0x11c   : > { %v1395_v0 = vpack.c.bf16 %v982_v54, %v982_v54  ;;  %v951_v3 = vmul.f32 0.1, %v919_v56  ;;  %848 = vst.msk [vmem:[#allocation2 + $0x48] sm:$0xff] %vm272_vm0, %v815_v60  ;;  %864 = vst.msk [vmem:[#allocation2 + $0xc8] sm:$0xff] %vm272_vm0, %v831_v61 }
 0x11d   : > { %v1411_v1 = vpack.c.bf16 %v998_v55, %v998_v55  ;;  %v967_v4 = vmul.f32 0.1, %v935_v57  ;;  %v881_v5 = vld [vmem:[#allocation2 + $0x38] sm:$0xff]  ;;  %v719_v13 = vpop.f32.mrf.mxu0  ;;  %v783_v14 = vpop.f32.mrf.mxu1 }
 0x11e   : > { %v897_v6 = vld [vmem:[#allocation2 + $0xb8] sm:$0xff]  ;;  %v920_v9 = vadd.f32 %v1739_v2, %v881_v5  ;;  %1143 = vst.msk [vmem:[%s1753_s22 + $0x14] sm:$0xf] %vm1137_vm4, %v1395_v0  ;;  %v983_v11 = vmax.f32 %v919_v56, %v951_v3  ;;  %v816_v17 = vadd.f32 %v719_v13, %v315_v62  ;;  %v832_v18 = vadd.f32 %v783_v14, %v331_v63  ;;  %v334_v3 = vld [vmem:[#allocation2 + $0xe8] sm:$0xff]  ;;  %v319_v14 = vld [vmem:[#allocation2 + $0x70] sm:$0xff] }
 0x11f   : > { %v936_v10 = vadd.f32 %v1739_v2, %v897_v6  ;;  %1159 = vst.msk [vmem:[%s1753_s22 + $0x54] sm:$0xf] %vm1137_vm4, %v1411_v1  ;;  %v999_v12 = vmax.f32 %v935_v57, %v967_v4  ;;  %v882_v21 = vld [vmem:[#allocation2 + $0x40] sm:$0xff]  ;;  %v721_v23 = vpop.f32.mrf.mxu0  ;;  %v785_v24 = vpop.f32.mrf.mxu1  ;;  %v318_v1 = vld [vmem:[#allocation2 + $0x68] sm:$0xff] }
 0x120   : > { %v952_v15 = vmul.f32 0.1, %v920_v9  ;;  %v1396_v19 = vpack.c.bf16 %v983_v11, %v983_v11  ;;  %v898_v22 = vld [vmem:[#allocation2 + $0xc0] sm:$0xff]  ;;  %v921_v27 = vadd.f32 %v1739_v2, %v882_v21  ;;  %849 = vst.msk [vmem:[#allocation2 + $0x50] sm:$0xff] %vm272_vm0, %v816_v17  ;;  %865 = vst.msk [vmem:[#allocation2 + $0xd0] sm:$0xff] %vm272_vm0, %v832_v18 }
 0x121   : > { %v968_v16 = vmul.f32 0.1, %v936_v10  ;;  %v1412_v20 = vpack.c.bf16 %v999_v12, %v999_v12  ;;  %v937_v28 = vadd.f32 %v1739_v2, %v898_v22  ;;  %v722_v31 = vpop.f32.mrf.mxu0  ;;  %v786_v32 = vpop.f32.mrf.mxu1 }
 0x122   : > { %v984_v25 = vmax.f32 %v920_v9, %v952_v15  ;;  %1144 = vst.msk [vmem:[%s1753_s22 + $0x18] sm:$0xf] %vm1137_vm4, %v1396_v19  ;;  %v953_v35 = vmul.f32 0.1, %v921_v27  ;;  %v817_v39 = vadd.f32 %v722_v31, %v316_v29  ;;  %v833_v40 = vadd.f32 %v786_v32, %v332_v30  ;;  %v335_v15 = vld [vmem:[#allocation2 + $0xf0] sm:$0xff]  ;;  %v320_v32 = vld [vmem:[#allocation2 + $0x78] sm:$0xff] }
 0x123   : > { %v1000_v26 = vmax.f32 %v936_v10, %v968_v16  ;;  %1160 = vst.msk [vmem:[%s1753_s22 + $0x58] sm:$0xf] %vm1137_vm4, %v1412_v20  ;;  %v969_v36 = vmul.f32 0.1, %v937_v28  ;;  %v883_v37 = vld [vmem:[#allocation2 + $0x48] sm:$0xff]  ;;  %v724_v41 = vpop.f32.mrf.mxu0  ;;  %v788_v42 = vpop.f32.mrf.mxu1 }
 0x124   : > { %v1397_v33 = vpack.c.bf16 %v984_v25, %v984_v25  ;;  %v899_v38 = vld [vmem:[#allocation2 + $0xc8] sm:$0xff]  ;;  %v985_v43 = vmax.f32 %v921_v27, %v953_v35  ;;  %v922_v45 = vadd.f32 %v1739_v2, %v883_v37  ;;  %850 = vst.msk [vmem:[#allocation2 + $0x58] sm:$0xff] %vm272_vm0, %v817_v39  ;;  %866 = vst.msk [vmem:[#allocation2 + $0xd8] sm:$0xff] %vm272_vm0, %v833_v40 }
 0x125   : > { %v1413_v34 = vpack.c.bf16 %v1000_v26, %v1000_v26  ;;  %v1001_v44 = vmax.f32 %v937_v28, %v969_v36  ;;  %v938_v46 = vadd.f32 %v1739_v2, %v899_v38  ;;  %v727_v49 = vpop.f32.mrf.mxu0  ;;  %v791_v50 = vpop.f32.mrf.mxu1 }
 0x126   : > { %1145 = vst.msk [vmem:[%s1753_s22 + $0x1c] sm:$0xf] %vm1137_vm4, %v1397_v33  ;;  %v1398_v51 = vpack.c.bf16 %v985_v43, %v985_v43  ;;  %v954_v53 = vmul.f32 0.1, %v922_v45  ;;  %v818_v57 = vadd.f32 %v727_v49, %v317_v47  ;;  %v834_v58 = vadd.f32 %v791_v50, %v333_v48  ;;  %v336_v33 = vld [vmem:[#allocation2 + $0xf8] sm:$0xff] }
 0x127   : > { %1161 = vst.msk [vmem:[%s1753_s22 + $0x5c] sm:$0xf] %vm1137_vm4, %v1413_v34  ;;  %v1414_v52 = vpack.c.bf16 %v1001_v44, %v1001_v44  ;;  %v970_v54 = vmul.f32 0.1, %v938_v46  ;;  %v884_v55 = vld [vmem:[#allocation2 + $0x50] sm:$0xff]  ;;  %v729_v59 = vpop.f32.mrf.mxu0  ;;  %v793_v60 = vpop.f32.mrf.mxu1 }
 0x128   : > { %v900_v56 = vld [vmem:[#allocation2 + $0xd0] sm:$0xff]  ;;  %1146 = vst.msk [vmem:[%s1753_s22 + $0x20] sm:$0xf] %vm1137_vm4, %v1398_v51  ;;  %v986_v61 = vmax.f32 %v922_v45, %v954_v53  ;;  %v923_v63 = vadd.f32 %v1739_v2, %v884_v55 }
 0x129   : > { %1162 = vst.msk [vmem:[%s1753_s22 + $0x60] sm:$0xf] %vm1137_vm4, %v1414_v52  ;;  %v1002_v62 = vmax.f32 %v938_v46, %v970_v54  ;;  %v939_v0 = vadd.f32 %v1739_v2, %v900_v56  ;;  %v730_v4 = vpop.f32.mrf.mxu0  ;;  %v794_v5 = vpop.f32.mrf.mxu1 }
 0x12a   : > { %851 = vst.msk [vmem:[#allocation2 + $0x60] sm:$0xff] %vm272_vm0, %v818_v57  ;;  %867 = vst.msk [vmem:[#allocation2 + $0xe0] sm:$0xff] %vm272_vm0, %v834_v58  ;;  %v1399_v6 = vpack.c.bf16 %v986_v61, %v986_v61  ;;  %v955_v8 = vmul.f32 0.1, %v923_v63  ;;  %v819_v10 = vadd.f32 %v730_v4, %v318_v1  ;;  %v835_v11 = vadd.f32 %v794_v5, %v334_v3 }
 0x12b   : > { %v1415_v7 = vpack.c.bf16 %v1002_v62, %v1002_v62  ;;  %v971_v9 = vmul.f32 0.1, %v939_v0  ;;  %v732_v12 = vpop.f32.mrf.mxu0  ;;  %v796_v13 = vpop.f32.mrf.mxu1  ;;  %v885_v18 = vld [vmem:[#allocation2 + $0x58] sm:$0xff] }
 0x12c   : > { %1147 = vst.msk [vmem:[%s1753_s22 + $0x24] sm:$0xf] %vm1137_vm4, %v1399_v6  ;;  %v987_v16 = vmax.f32 %v923_v63, %v955_v8  ;;  %v901_v19 = vld [vmem:[#allocation2 + $0xd8] sm:$0xff]  ;;  %v924_v20 = vadd.f32 %v1739_v2, %v885_v18 }
 0x12d   : > { %1163 = vst.msk [vmem:[%s1753_s22 + $0x64] sm:$0xf] %vm1137_vm4, %v1415_v7  ;;  %v1003_v17 = vmax.f32 %v939_v0, %v971_v9  ;;  %v940_v21 = vadd.f32 %v1739_v2, %v901_v19  ;;  %v735_v22 = vpop.f32.mrf.mxu0  ;;  %v799_v23 = vpop.f32.mrf.mxu1 }
 0x12e   : > { %852 = vst.msk [vmem:[#allocation2 + $0x68] sm:$0xff] %vm272_vm0, %v819_v10  ;;  %868 = vst.msk [vmem:[#allocation2 + $0xe8] sm:$0xff] %vm272_vm0, %v835_v11  ;;  %v1400_v24 = vpack.c.bf16 %v987_v16, %v987_v16  ;;  %v820_v26 = vadd.f32 %v735_v22, %v319_v14  ;;  %v836_v27 = vadd.f32 %v799_v23, %v335_v15  ;;  %v956_v28 = vmul.f32 0.1, %v924_v20 }
 0x12f   : > { %v1416_v25 = vpack.c.bf16 %v1003_v17, %v1003_v17  ;;  %v972_v29 = vmul.f32 0.1, %v940_v21  ;;  %v737_v30 = vpop.f32.mrf.mxu0  ;;  %v801_v31 = vpop.f32.mrf.mxu1 }
 0x130   : > { %1148 = vst.msk [vmem:[%s1753_s22 + $0x28] sm:$0xf] %vm1137_vm4, %v1400_v24  ;;  %v988_v36 = vmax.f32 %v924_v20, %v956_v28 }
 0x131   : > { %1164 = vst.msk [vmem:[%s1753_s22 + $0x68] sm:$0xf] %vm1137_vm4, %v1416_v25  ;;  %v886_v34 = vld [vmem:[#allocation2 + $0x60] sm:$0xff]  ;;  %v1004_v37 = vmax.f32 %v940_v21, %v972_v29  ;;  %v738_v40 = vpop.f32.mrf.mxu0  ;;  %v802_v41 = vpop.f32.mrf.mxu1 }
 0x132   : > { %v902_v35 = vld [vmem:[#allocation2 + $0xe0] sm:$0xff]  ;;  %853 = vst.msk [vmem:[#allocation2 + $0x70] sm:$0xff] %vm272_vm0, %v820_v26  ;;  %869 = vst.msk [vmem:[#allocation2 + $0xf0] sm:$0xff] %vm272_vm0, %v836_v27  ;;  %v925_v38 = vadd.f32 %v1739_v2, %v886_v34  ;;  %v821_v42 = vadd.f32 %v738_v40, %v320_v32  ;;  %v837_v43 = vadd.f32 %v802_v41, %v336_v33 }
 0x133   : > { %v941_v39 = vadd.f32 %v1739_v2, %v902_v35  ;;  %v1401_v44 = vpack.c.bf16 %v988_v36, %v988_v36  ;;  %v1417_v45 = vpack.c.bf16 %v1004_v37, %v1004_v37  ;;  %v740_v48 = vpop.f32.mrf.mxu0  ;;  %v804_v49 = vpop.f32.mrf.mxu1 }
 0x134   : > { %v957_v46 = vmul.f32 0.1, %v925_v38  ;;  %854 = vst.msk [vmem:[#allocation2 + $0x78] sm:$0xff] %vm272_vm0, %v821_v42  ;;  %870 = vst.msk [vmem:[#allocation2 + $0xf8] sm:$0xff] %vm272_vm0, %v837_v43 }
 0x135   : > { %v973_v47 = vmul.f32 0.1, %v941_v39  ;;  %v887_v50 = vld [vmem:[#allocation2 + $0x68] sm:$0xff]  ;;  %1149 = vst.msk [vmem:[%s1753_s22 + $0x2c] sm:$0xf] %vm1137_vm4, %v1401_v44 }
 0x136   : > { %v903_v51 = vld [vmem:[#allocation2 + $0xe8] sm:$0xff]  ;;  %1165 = vst.msk [vmem:[%s1753_s22 + $0x6c] sm:$0xf] %vm1137_vm4, %v1417_v45  ;;  %v989_v52 = vmax.f32 %v925_v38, %v957_v46  ;;  %v926_v54 = vadd.f32 %v1739_v2, %v887_v50 }
 0x137   : > { %v1005_v53 = vmax.f32 %v941_v39, %v973_v47  ;;  %v942_v55 = vadd.f32 %v1739_v2, %v903_v51 }
 0x138   : > { %v1402_v56 = vpack.c.bf16 %v989_v52, %v989_v52  ;;  %v958_v58 = vmul.f32 0.1, %v926_v54 }
 0x139   : > { %v1418_v57 = vpack.c.bf16 %v1005_v53, %v1005_v53  ;;  %v974_v59 = vmul.f32 0.1, %v942_v55  ;;  %v888_v60 = vld [vmem:[#allocation2 + $0x70] sm:$0xff] }
 0x13a   : > { %v904_v61 = vld [vmem:[#allocation2 + $0xf0] sm:$0xff]  ;;  %v927_v62 = vadd.f32 %v1739_v2, %v888_v60  ;;  %1150 = vst.msk [vmem:[%s1753_s22 + $0x30] sm:$0xf] %vm1137_vm4, %v1402_v56  ;;  %v990_v0 = vmax.f32 %v926_v54, %v958_v58 }
 0x13b   : > { %v943_v63 = vadd.f32 %v1739_v2, %v904_v61  ;;  %1166 = vst.msk [vmem:[%s1753_s22 + $0x70] sm:$0xf] %vm1137_vm4, %v1418_v57  ;;  %v1006_v1 = vmax.f32 %v942_v55, %v974_v59  ;;  %v889_v7 = vld [vmem:[#allocation2 + $0x78] sm:$0xff] }
 0x13c   : > { %v959_v3 = vmul.f32 0.1, %v927_v62  ;;  %v1403_v5 = vpack.c.bf16 %v990_v0, %v990_v0  ;;  %v905_v8 = vld [vmem:[#allocation2 + $0xf8] sm:$0xff]  ;;  %v928_v11 = vadd.f32 %v1739_v2, %v889_v7 }
 0x13d   : > { %v975_v4 = vmul.f32 0.1, %v943_v63  ;;  %v1419_v6 = vpack.c.bf16 %v1006_v1, %v1006_v1  ;;  %v944_v12 = vadd.f32 %v1739_v2, %v905_v8 }
 0x13e   : > { %v991_v9 = vmax.f32 %v927_v62, %v959_v3  ;;  %1151 = vst.msk [vmem:[%s1753_s22 + $0x34] sm:$0xf] %vm1137_vm4, %v1403_v5  ;;  %v960_v15 = vmul.f32 0.1, %v928_v11 }
 0x13f   : > { %v1007_v10 = vmax.f32 %v943_v63, %v975_v4  ;;  %1167 = vst.msk [vmem:[%s1753_s22 + $0x74] sm:$0xf] %vm1137_vm4, %v1419_v6  ;;  %v976_v16 = vmul.f32 0.1, %v944_v12 }
 0x140   : > { %v1404_v13 = vpack.c.bf16 %v991_v9, %v991_v9  ;;  %v992_v17 = vmax.f32 %v928_v11, %v960_v15 }
 0x141   : > { %v1420_v14 = vpack.c.bf16 %v1007_v10, %v1007_v10  ;;  %v1008_v18 = vmax.f32 %v944_v12, %v976_v16 }
 0x142   : > { %1152 = vst.msk [vmem:[%s1753_s22 + $0x38] sm:$0xf] %vm1137_vm4, %v1404_v13  ;;  %v1405_v19 = vpack.c.bf16 %v992_v17, %v992_v17 }
 0x143   : > { %1168 = vst.msk [vmem:[%s1753_s22 + $0x78] sm:$0xf] %vm1137_vm4, %v1420_v14  ;;  %v1421_v20 = vpack.c.bf16 %v1008_v18, %v1008_v18 }
 0x144   : > { %1153 = vst.msk [vmem:[%s1753_s22 + $0x3c] sm:$0xf] %vm1137_vm4, %v1405_v19 }
 0x145   : > { %1169 = vst.msk [vmem:[%s1753_s22 + $0x7c] sm:$0xf] %vm1137_vm4, %v1421_v20 }
 0x146 PF: > { %s13_s14 = sadd.s32 1, %s1549_s14   ;;  %s1884_s12 = smov %s1545_s13 }
 0x147   : > { %p10_p5 = scmp.ge.s32.totalorder %s13_s14, 10   ;;  %s1885_s13 = smov %s1887_s15 }
 0x149   :  { %12 = sbr.rel (!%p10_p5) target bundleno = 2 (0x2), region = 76 }

</bundles_post_ra>
